<compile_context>
chip_gen: v7x
topology: tpu7x:2x2x1
jax: 0.10.0
libtpu: 0.0.40
codegen_flags: <defaults>
</compile_context>

<pallas_src>
import functools
import math

import jax
import jax.numpy as jnp
from jax import lax
from jax.experimental import pallas as pl
from jax.experimental.pallas import tpu as pltpu


_PACK = 4            # tokens packed per lane-row -> 4 * 32 = 128 output lanes
_DEFAULT_TM = 1024   # packed-row tile (multiple of 8); ~0.5 MiB f32 output per tile


def _round_up(x, m):
    return ((x + m - 1) // m) * m


def _fused_embedding_kernel(num_layers, x_ref, *refs):
    """refs = (w1, b1, w2, b2, ..., wL, bL, o_ref).

    x_ref : (tm, P*num_vars)    packed input row-tile
    w_i   : (P*K_i, P*N_i)      block-diagonal packed weight (VMEM-resident)
    b_i   : (1, P*N_i)          P-tiled bias row            (VMEM-resident)
    o_ref : (tm, P*model_dim)   packed output row-tile
    """
    o_ref = refs[-1]
    inv_sqrt2 = jnp.float32(1.0 / math.sqrt(2.0))

    h = x_ref[...].astype(jnp.float32)
    for li in range(num_layers):           # unrolled at trace time (L is small)
        w_ref = refs[2 * li]
        b_ref = refs[2 * li + 1]
        y = jnp.dot(h, w_ref[...], preferred_element_type=jnp.float32)
        y = y + b_ref[...]                 # (1, N) broadcast over rows
        # Exact GELU (matches torch GELU approximate='none').
        h = 0.5 * y * (1.0 + lax.erf(y * inv_sqrt2))
    o_ref[...] = h.astype(o_ref.dtype)


def fused_initial_embedding(x, packed_ws, packed_bs, model_dim,
                            *, pack=_PACK, tm_max=_DEFAULT_TM):
    """x: (batch, seq, num_vars) f32. Returns gelu-MLP output (batch, seq, model_dim)."""
    assert tm_max % 8 == 0, "row tile must be a multiple of 8 (f32 sublane)"
    batch, seq, num_vars = x.shape
    P = pack
    L = len(packed_ws)
    N = P * model_dim

    M = batch * seq                        # token count
    Mp = pl.cdiv(M, P)                     # packed rows needed
    tm = min(tm_max, _round_up(Mp, 8))     # 8-aligned packed-row tile
    Mp_pad = _round_up(Mp, tm)             # whole number of tiles
    M_pad = Mp_pad * P

    x_flat = x.reshape(M, num_vars).astype(jnp.float32)
    if M_pad != M:
        x_flat = jnp.pad(x_flat, ((0, M_pad - M), (0, 0)))
    x_packed = x_flat.reshape(Mp_pad, P * num_vars)   # free row-major view

    in_specs = [pl.BlockSpec((tm, P * num_vars), lambda i: (i, 0))]
    operands = [x_packed]
    for w, b in zip(packed_ws, packed_bs):
        in_specs.append(pl.BlockSpec(w.shape, lambda i: (0, 0)))   # resident weight
        in_specs.append(pl.BlockSpec(b.shape, lambda i: (0, 0)))   # resident bias
        operands.append(w)
        operands.append(b)

    out = pl.pallas_call(
        functools.partial(_fused_embedding_kernel, L),
        out_shape=jax.ShapeDtypeStruct((Mp_pad, N), jnp.float32),
        grid_spec=pltpu.PrefetchScalarGridSpec(
            num_scalar_prefetch=0,
            grid=(Mp_pad // tm,),
            in_specs=in_specs,
            out_specs=pl.BlockSpec((tm, N), lambda i: (i, 0)),
        ),
        compiler_params=pltpu.CompilerParams(
            dimension_semantics=("parallel",),   # shard row tiles across TCs
        ),
    )(*operands)

    # Unpack (free reshape) and drop padding rows.
    out = out.reshape(M_pad, model_dim)[:M]
    return out.reshape(batch, seq, model_dim)


class InitialEmbeddingPallas:
    """JAX/Pallas re-implementation of tapte.modules.InitialEmbedding."""

    def __init__(self, options, key, *, pack=_PACK):
        self.num_of_layers = options["num_of_embedding_layers"]
        self.model_dim = options["model_dim"]
        self.pack = pack
        num_vars = len(options["variables"])

        # Deterministic synthetic parameters, matching torch.nn.Linear init range.
        # (PyTorch stores weight as (out, in); we keep the transposed (in, out)
        # layout used by the x @ W kernel.)
        dims = [num_vars] + [self.model_dim] * self.num_of_layers
        self.weights = []
        self.biases = []
        for li in range(self.num_of_layers):
            key, wk, bk = jax.random.split(key, 3)
            fan_in = dims[li]
            bound = 1.0 / math.sqrt(fan_in)
            self.weights.append(jax.random.uniform(
                wk, (dims[li], dims[li + 1]), jnp.float32, -bound, bound))
            self.biases.append(jax.random.uniform(
                bk, (dims[li + 1],), jnp.float32, -bound, bound))

        # Precompute lane-dense packed parameters once: block-diagonal weights
        # (kron with I_P) and P-tiled bias rows. All layers together are well
        # under 1 MiB, so they stay resident in VMEM across all grid steps.
        eye_p = jnp.eye(pack, dtype=jnp.float32)
        self.packed_ws = [jnp.kron(eye_p, w) for w in self.weights]
        self.packed_bs = [jnp.tile(b, pack).reshape(1, pack * b.shape[0])
                          for b in self.biases]

    def __call__(self, x, *, tm_max=_DEFAULT_TM):
        return fused_initial_embedding(
            x, self.packed_ws, self.packed_bs, self.model_dim,
            pack=self.pack, tm_max=tm_max)


def _reference(x, weights, biases):
    """Pure-JAX reference for a sanity check."""
    batch, seq, _ = x.shape
    h = x.reshape(batch * seq, -1)
    for w, b in zip(weights, biases):
        y = h @ w + b
        h = 0.5 * y * (1.0 + lax.erf(y * jnp.float32(1.0 / math.sqrt(2.0))))
    return h.reshape(batch, seq, -1)


if __name__ == "__main__":
    options = {
        "num_of_embedding_layers": 3,
        "model_dim": 32,
        "variables": ["pt", "eta", "phi", "mass"],   # 4 input features
    }

    key = jax.random.PRNGKey(0)
    key, pkey, xkey, xkey2 = jax.random.split(key, 4)

    module = InitialEmbeddingPallas(options, pkey)

    # Small shape consistent with the module (batch=2, seq=8, num_vars=4).
    batch, seq = 2, 8
    x = jax.random.normal(xkey, (batch, seq, len(options["variables"])), jnp.float32)
    out = jax.block_until_ready(module(x))
    ref = _reference(x, module.weights, module.biases)
    assert out.shape == (batch, seq, options["model_dim"])
    assert jnp.allclose(out, ref, atol=1e-5, rtol=1e-5), "mismatch vs. JAX reference"

    # Larger shape exercising a multi-step grid, 8-alignment and row padding.
    batch2, seq2 = 32, 100   # 3200 tokens -> 800 packed rows -> grid of 4 at tm=256
    x2 = jax.random.normal(xkey2, (batch2, seq2, len(options["variables"])), jnp.float32)
    out2 = jax.block_until_ready(module(x2, tm_max=256))
    ref2 = _reference(x2, module.weights, module.biases)
    assert out2.shape == (batch2, seq2, options["model_dim"])
    assert jnp.allclose(out2, ref2, atol=1e-5, rtol=1e-5), "mismatch vs. JAX reference (tiled)"

    print("KERNEL_OK")
</pallas_src>

<mosaic_0001>
module attributes {stable_mosaic.version = 11 : i64} {
  func.func @_fused_embedding_kernel(%arg0: i32, %arg1: memref<8x16xf32, #tpu.memory_space<vmem>>, %arg2: memref<16x128xf32, #tpu.memory_space<vmem>>, %arg3: memref<1x128xf32, #tpu.memory_space<vmem>>, %arg4: memref<128x128xf32, #tpu.memory_space<vmem>>, %arg5: memref<1x128xf32, #tpu.memory_space<vmem>>, %arg6: memref<128x128xf32, #tpu.memory_space<vmem>>, %arg7: memref<1x128xf32, #tpu.memory_space<vmem>>, %arg8: memref<8x128xf32, #tpu.memory_space<vmem>>) attributes {dimension_semantics = [#tpu.dimension_semantics<parallel>], iteration_bounds = array<i64: 1>, scalar_prefetch = 0 : i64, scratch_operands = 0 : i64, tpu.core_type = #tpu.core_type<tc>, window_params = [{transform_indices = @transform_0, window_bounds = array<i64: 8, 16>}, {pipeline_mode = #tpu.pipeline_mode<synchronous>, transform_indices = @transform_1, window_bounds = array<i64: 16, 128>}, {pipeline_mode = #tpu.pipeline_mode<synchronous>, transform_indices = @transform_2, window_bounds = array<i64: 1, 128>}, {pipeline_mode = #tpu.pipeline_mode<synchronous>, transform_indices = @transform_3, window_bounds = array<i64: 128, 128>}, {pipeline_mode = #tpu.pipeline_mode<synchronous>, transform_indices = @transform_4, window_bounds = array<i64: 1, 128>}, {pipeline_mode = #tpu.pipeline_mode<synchronous>, transform_indices = @transform_5, window_bounds = array<i64: 128, 128>}, {pipeline_mode = #tpu.pipeline_mode<synchronous>, transform_indices = @transform_6, window_bounds = array<i64: 1, 128>}, {transform_indices = @transform_7, window_bounds = array<i64: 8, 128>}]} {
    %c0 = arith.constant 0 : index
    %c0_0 = arith.constant 0 : index
    %0 = vector.load %arg1[%c0, %c0_0] : memref<8x16xf32, #tpu.memory_space<vmem>>, vector<8x16xf32>
    %c0_1 = arith.constant 0 : index
    %c0_2 = arith.constant 0 : index
    %1 = vector.load %arg2[%c0_1, %c0_2] : memref<16x128xf32, #tpu.memory_space<vmem>>, vector<16x128xf32>
    %cst = arith.constant dense<0.000000e+00> : vector<8x128xf32>
    %2 = tpu.matmul %0, %1, %cst {dimension_numbers = #tpu.dot_dimension_numbers<[1], [0], [0], [1], [0, 0, 1, 1], [], []>} : vector<8x16xf32>, vector<16x128xf32>, vector<8x128xf32> -> vector<8x128xf32>
    %c0_3 = arith.constant 0 : index
    %c0_4 = arith.constant 0 : index
    %3 = vector.load %arg3[%c0_3, %c0_4] : memref<1x128xf32, #tpu.memory_space<vmem>>, vector<1x128xf32>
    %4 = vector.broadcast %3 : vector<1x128xf32> to vector<8x128xf32>
    %5 = arith.addf %2, %4 : vector<8x128xf32>
    %cst_5 = arith.constant 5.000000e-01 : f32
    %6 = vector.broadcast %cst_5 : f32 to vector<8x128xf32>
    %7 = arith.mulf %6, %5 : vector<8x128xf32>
    %cst_6 = arith.constant 0.707106769 : f32
    %8 = vector.broadcast %cst_6 : f32 to vector<8x128xf32>
    %9 = arith.mulf %5, %8 : vector<8x128xf32>
    %10 = math.erf %9 : vector<8x128xf32>
    %cst_7 = arith.constant 1.000000e+00 : f32
    %11 = vector.broadcast %cst_7 : f32 to vector<8x128xf32>
    %12 = arith.addf %11, %10 : vector<8x128xf32>
    %13 = arith.mulf %7, %12 : vector<8x128xf32>
    %c0_8 = arith.constant 0 : index
    %c0_9 = arith.constant 0 : index
    %14 = vector.load %arg4[%c0_8, %c0_9] : memref<128x128xf32, #tpu.memory_space<vmem>>, vector<128x128xf32>
    %cst_10 = arith.constant dense<0.000000e+00> : vector<8x128xf32>
    %15 = tpu.matmul %13, %14, %cst_10 {dimension_numbers = #tpu.dot_dimension_numbers<[1], [0], [0], [1], [0, 0, 1, 1], [], []>} : vector<8x128xf32>, vector<128x128xf32>, vector<8x128xf32> -> vector<8x128xf32>
    %c0_11 = arith.constant 0 : index
    %c0_12 = arith.constant 0 : index
    %16 = vector.load %arg5[%c0_11, %c0_12] : memref<1x128xf32, #tpu.memory_space<vmem>>, vector<1x128xf32>
    %17 = vector.broadcast %16 : vector<1x128xf32> to vector<8x128xf32>
    %18 = arith.addf %15, %17 : vector<8x128xf32>
    %cst_13 = arith.constant 5.000000e-01 : f32
    %19 = vector.broadcast %cst_13 : f32 to vector<8x128xf32>
    %20 = arith.mulf %19, %18 : vector<8x128xf32>
    %cst_14 = arith.constant 0.707106769 : f32
    %21 = vector.broadcast %cst_14 : f32 to vector<8x128xf32>
    %22 = arith.mulf %18, %21 : vector<8x128xf32>
    %23 = math.erf %22 : vector<8x128xf32>
    %cst_15 = arith.constant 1.000000e+00 : f32
    %24 = vector.broadcast %cst_15 : f32 to vector<8x128xf32>
    %25 = arith.addf %24, %23 : vector<8x128xf32>
    %26 = arith.mulf %20, %25 : vector<8x128xf32>
    %c0_16 = arith.constant 0 : index
    %c0_17 = arith.constant 0 : index
    %27 = vector.load %arg6[%c0_16, %c0_17] : memref<128x128xf32, #tpu.memory_space<vmem>>, vector<128x128xf32>
    %cst_18 = arith.constant dense<0.000000e+00> : vector<8x128xf32>
    %28 = tpu.matmul %26, %27, %cst_18 {dimension_numbers = #tpu.dot_dimension_numbers<[1], [0], [0], [1], [0, 0, 1, 1], [], []>} : vector<8x128xf32>, vector<128x128xf32>, vector<8x128xf32> -> vector<8x128xf32>
    %c0_19 = arith.constant 0 : index
    %c0_20 = arith.constant 0 : index
    %29 = vector.load %arg7[%c0_19, %c0_20] : memref<1x128xf32, #tpu.memory_space<vmem>>, vector<1x128xf32>
    %30 = vector.broadcast %29 : vector<1x128xf32> to vector<8x128xf32>
    %31 = arith.addf %28, %30 : vector<8x128xf32>
    %cst_21 = arith.constant 5.000000e-01 : f32
    %32 = vector.broadcast %cst_21 : f32 to vector<8x128xf32>
    %33 = arith.mulf %32, %31 : vector<8x128xf32>
    %cst_22 = arith.constant 0.707106769 : f32
    %34 = vector.broadcast %cst_22 : f32 to vector<8x128xf32>
    %35 = arith.mulf %31, %34 : vector<8x128xf32>
    %36 = math.erf %35 : vector<8x128xf32>
    %cst_23 = arith.constant 1.000000e+00 : f32
    %37 = vector.broadcast %cst_23 : f32 to vector<8x128xf32>
    %38 = arith.addf %37, %36 : vector<8x128xf32>
    %39 = arith.mulf %33, %38 : vector<8x128xf32>
    %c0_24 = arith.constant 0 : index
    %c0_25 = arith.constant 0 : index
    %40 = vector.load %arg8[%c0_24, %c0_25] : memref<8x128xf32, #tpu.memory_space<vmem>>, vector<8x128xf32>
    tpu.vector_store %arg8[%c0_24, %c0_25], %39 {strides = array<i32>} : memref<8x128xf32, #tpu.memory_space<vmem>>, vector<8x128xf32>,
    return
  }
  func.func @transform_0(%arg0: i32) -> (i32, i32) {
    %c0_i32 = arith.constant 0 : i32
    %c0_i32_0 = arith.constant 0 : i32
    return %arg0, %c0_i32 : i32, i32
  }
  func.func @transform_1(%arg0: i32) -> (i32, i32) {
    %c0_i32 = arith.constant 0 : i32
    %c0_i32_0 = arith.constant 0 : i32
    %c0_i32_1 = arith.constant 0 : i32
    return %c0_i32, %c0_i32_0 : i32, i32
  }
  func.func @transform_2(%arg0: i32) -> (i32, i32) {
    %c0_i32 = arith.constant 0 : i32
    %c0_i32_0 = arith.constant 0 : i32
    %c0_i32_1 = arith.constant 0 : i32
    return %c0_i32, %c0_i32_0 : i32, i32
  }
  func.func @transform_3(%arg0: i32) -> (i32, i32) {
    %c0_i32 = arith.constant 0 : i32
    %c0_i32_0 = arith.constant 0 : i32
    %c0_i32_1 = arith.constant 0 : i32
    return %c0_i32, %c0_i32_0 : i32, i32
  }
  func.func @transform_4(%arg0: i32) -> (i32, i32) {
    %c0_i32 = arith.constant 0 : i32
    %c0_i32_0 = arith.constant 0 : i32
    %c0_i32_1 = arith.constant 0 : i32
    return %c0_i32, %c0_i32_0 : i32, i32
  }
  func.func @transform_5(%arg0: i32) -> (i32, i32) {
    %c0_i32 = arith.constant 0 : i32
    %c0_i32_0 = arith.constant 0 : i32
    %c0_i32_1 = arith.constant 0 : i32
    return %c0_i32, %c0_i32_0 : i32, i32
  }
  func.func @transform_6(%arg0: i32) -> (i32, i32) {
    %c0_i32 = arith.constant 0 : i32
    %c0_i32_0 = arith.constant 0 : i32
    %c0_i32_1 = arith.constant 0 : i32
    return %c0_i32, %c0_i32_0 : i32, i32
  }
  func.func @transform_7(%arg0: i32) -> (i32, i32) {
    %c0_i32 = arith.constant 0 : i32
    %c0_i32_0 = arith.constant 0 : i32
    return %arg0, %c0_i32 : i32, i32
  }
}

</mosaic_0001>

<bundles_post_ra>
// kernel: tpu_custom_call.1
= control target key start
LH: loop header
LB: loop body
LE: loop exit
PB: predicated region body
PF: predicated region fallthrough
CT: control target
= control target key end

     0   :  { %12 = vsyncpa [#allocation3], 0  ;;  %s834_s0 = inlined_call_operand.hbm [shape: f32[8,16], index: 0, kind: input, shape index: {}]   ;;  %s835_s1 = inlined_call_operand.hbm [shape: f32[16,128], index: 1, kind: input, shape index: {}]   ;;  %s836_s2 = inlined_call_operand.vmem [shape: f32[1,128], index: 2, kind: input, shape index: {}]   ;;  %s837_s3 = inlined_call_operand.hbm [shape: f32[128,128], index: 3, kind: input, shape index: {}]   ;;  %s838_s4 = inlined_call_operand.vmem [shape: f32[1,128], index: 4, kind: input, shape index: {}]   ;;  %s839_s5 = inlined_call_operand.hbm [shape: f32[128,128], index: 5, kind: input, shape index: {}]   ;;  %s840_s6 = inlined_call_operand.vmem [shape: f32[1,128], index: 6, kind: input, shape index: {}]   ;;  %s841_s7 = inlined_call_operand.hbm [shape: f32[8,128], index: 7, kind: output, shape index: {}]  }
   0x1   :  { %13 = vsyncpa [#allocation6], 0 }
   0x2   :  { %14 = vsyncpa [#allocation9], 0 }
   0x3   :  { %15 = vsyncpa [#allocation4], 0  ;;  %s686_s24 = smov [#allocation5]   ;;  %s568_s28 = scalar_lea.hbm %s835_s1, 256 }
   0x4   :  { %s31_s25 = sshll.u32 %s686_s24, 4  ;;  %p569_p0 = scmp.ne.s32.totalorder %s835_s1, %s568_s28  ;;  %s32_s25 = int_to_ptr.vmem [resolvable:$true] %s31_s25 }
   0x5   :  { %p572_p1 = scmp.lt.u32.totalorder %s568_s28, %s835_s1 }
   0x7   :  { %p574_p2 = pnand %p572_p1, %p569_p0 }
   0x9   :  { %577 = shalt.err (!%p574_p2)
}
   0xa   :  { %s578_s10 = scalar_lea.vmem %s32_s25, 256  ;;  %p583_p4 = scmp.lt.s32.totalorder %s32_s25, %s32_s25 }
   0xb   :  { %p579_p3 = scmp.ne.s32.totalorder %s32_s25, %s578_s10  ;;  %p584_p5 = scmp.lt.s32.totalorder %s578_s10, %s578_s10 }
   0xd   :  { %p585_p6 = por %p584_p5, %p583_p4 }
   0xf   :  { %p586_p7 = pnand %p585_p6, %p579_p3 }
  0x11   :  { %589 = shalt.err (!%p586_p7)
}
  0x12   :  { %s687_s11 = smov 128   ;;  %s688_s12 = smov 8  }
  0x13   :  { %37 = dma.hbm_to_vmem [thread:$0]  %s835_s1, 256, %s32_s25, [#allocation6], %s687_s11, %s687_s11, %s688_s12  }
  0x14   :  { %s689_s15 = smov [#allocation2]   ;;  %s690_s17 = smov [#allocation7]  }
  0x15   :  { %s22_s16 = sshll.u32 %s689_s15, 4  ;;  %s45_s18 = sshll.u32 %s690_s17, 4  ;;  %s23_s16 = int_to_ptr.vmem [resolvable:$true] %s22_s16  ;;  %s46_s18 = int_to_ptr.vmem [resolvable:$true] %s45_s18 }
  0x16   :  { %s590_s21 = scalar_lea.hbm %s834_s0, 128 }
  0x17   :  { %p591_p8 = scmp.ne.s32.totalorder %s834_s0, %s590_s21  ;;  %p594_p9 = scmp.lt.u32.totalorder %s590_s21, %s834_s0 }
  0x19   :  { %p596_p10 = pnand %p594_p9, %p591_p8 }
  0x1b   :  { %599 = shalt.err (!%p596_p10)
}
  0x1c   :  { %s600_s1 = scalar_lea.vmem %s23_s16, 128  ;;  %p605_p12 = scmp.lt.s32.totalorder %s23_s16, %s23_s16 }
  0x1d   :  { %p601_p11 = scmp.ne.s32.totalorder %s23_s16, %s600_s1  ;;  %p606_p13 = scmp.lt.s32.totalorder %s600_s1, %s600_s1 }
  0x1f   :  { %p607_p0 = por %p606_p13, %p605_p12 }
  0x21   :  { %p608_p1 = pnand %p607_p0, %p601_p11 }
  0x23   :  { %611 = shalt.err (!%p608_p1)
}
  0x24   :  { %25 = dma.hbm_to_vmem [thread:$0]  %s834_s0, 128, %s23_s16, [#allocation3]  }
  0x25   :  { %s612_s30 = scalar_lea.hbm %s837_s3, 2048 }
  0x26   :  { %p613_p2 = scmp.ne.s32.totalorder %s837_s3, %s612_s30  ;;  %p616_p3 = scmp.lt.u32.totalorder %s612_s30, %s837_s3 }
  0x28   :  { %p618_p4 = pnand %p616_p3, %p613_p2 }
  0x2a   :  { %621 = shalt.err (!%p618_p4)
}
  0x2b   :  { %s622_s14 = scalar_lea.vmem %s46_s18, 2048  ;;  %p627_p6 = scmp.lt.s32.totalorder %s46_s18, %s46_s18 }
  0x2c   :  { %p623_p5 = scmp.ne.s32.totalorder %s46_s18, %s622_s14  ;;  %p628_p7 = scmp.lt.s32.totalorder %s622_s14, %s622_s14 }
  0x2e   :  { %p629_p8 = por %p628_p7, %p627_p6 }
  0x30   :  { %p630_p9 = pnand %p629_p8, %p623_p5 }
  0x32   :  { %633 = shalt.err (!%p630_p9)
}
  0x33   :  { %51 = dma.hbm_to_vmem [thread:$0]  %s837_s3, 2048, %s46_s18, [#allocation6], %s687_s11, %s687_s11, %s688_s12  }
  0x34   :  { %s691_s16 = smov [#allocation8]   ;;  %s634_s21 = scalar_lea.hbm %s839_s5, 2048 }
  0x35   :  { %s59_s17 = sshll.u32 %s691_s16, 4  ;;  %p635_p10 = scmp.ne.s32.totalorder %s839_s5, %s634_s21  ;;  %s60_s17 = int_to_ptr.vmem [resolvable:$true] %s59_s17 }
  0x36   :  { %p638_p11 = scmp.lt.u32.totalorder %s634_s21, %s839_s5 }
  0x38   :  { %p640_p12 = pnand %p638_p11, %p635_p10 }
  0x3a   :  { %643 = shalt.err (!%p640_p12)
}
  0x3b   :  { %s644_s1 = scalar_lea.vmem %s60_s17, 2048  ;;  %p649_p0 = scmp.lt.s32.totalorder %s60_s17, %s60_s17 }
  0x3c   :  { %p645_p13 = scmp.ne.s32.totalorder %s60_s17, %s644_s1  ;;  %p650_p1 = scmp.lt.s32.totalorder %s644_s1, %s644_s1 }
  0x3e   :  { %p651_p2 = por %p650_p1, %p649_p0 }
  0x40   :  { %p652_p3 = pnand %p651_p2, %p645_p13 }
  0x42   :  { %655 = shalt.err (!%p652_p3)
}
  0x43   :  { %65 = dma.hbm_to_vmem [thread:$0]  %s839_s5, 2048, %s60_s17, [#allocation9], %s687_s11, %s687_s11, %s688_s12  }
  0x44   :  { %678 = dma.done.wait [#allocation3], 128  }
  0x45   :  { %679 = vsyncadd [#allocation3], 4294967168 }
  0x46   :  { %680 = dma.done.wait [#allocation6], 2304  }
  0x47   :  { %681 = vsyncadd [#allocation6], 4294964992 }
  0x48   :  { %682 = dma.done.wait [#allocation9], 2048  }
  0x49   :  { %683 = vsyncadd [#allocation9], 4294965248  ;;  %v692_v0 = vmov 0.0|0.0   ;;  %vm693_vm0 = vmmov 0   ;;  %v694_v1 = vmov 0.0   ;;  %v81_v2 = vld [vmem:[#allocation5] sm:$0xff] }
  0x4a   :  { %501 = vmatprep.subr.bf16.mxu0 %v692_v0  ;;  %428 = vmatprep.mubr.msk.f32.mxu0 %vm693_vm0, %v694_v1  ;;  %v82_v3 = vld [vmem:[#allocation5 + $0x8] sm:$0xff]  ;;  %v169_v5 = vld [vmem:[#allocation7] sm:$0xff]  ;;  %v170_v6 = vld [vmem:[#allocation7 + $0x8] sm:$0xff]  ;;  %vm90_vm1 = vcmask 130048  }
  0x4b   :  { %504 = vmatprep.subr.bf16.mxu1 %v692_v0  ;;  %463 = vmatprep.mubr.msk.f32.mxu1 %vm693_vm0, %v694_v1  ;;  %v502_v4 = vpack.c.bf16 %v82_v3, %v81_v2  ;;  %v171_v7 = vld [vmem:[#allocation7 + $0x10] sm:$0xff]  ;;  %v505_v8 = vpack.c.bf16 %v170_v6, %v169_v5  ;;  %v172_v9 = vld [vmem:[#allocation7 + $0x18] sm:$0xff]  ;;  %v80_v10 = vld [vmem:[#allocation2] sm:$0xff] }
  0x4c   :  { %v508_v11 = vpack.c.bf16 %v172_v9, %v171_v7  ;;  %v173_v12 = vld [vmem:[#allocation7 + $0x20] sm:$0xff]  ;;  %v174_v13 = vld [vmem:[#allocation7 + $0x28] sm:$0xff]  ;;  %v175_v15 = vld [vmem:[#allocation7 + $0x30] sm:$0xff] }
  0x4d   :  { %503 = vmatpush3.bf16.msra.mxu0 %v502_v4  ;;  %506 = vmatpush3.bf16.msra.mxu1 %v505_v8  ;;  %v511_v14 = vpack.c.bf16 %v174_v13, %v173_v12  ;;  %v176_v16 = vld [vmem:[#allocation7 + $0x38] sm:$0xff]  ;;  %v177_v18 = vld [vmem:[#allocation7 + $0x40] sm:$0xff]  ;;  %v178_v19 = vld [vmem:[#allocation7 + $0x48] sm:$0xff] }
  0x4e   :  { %528 = vmatprep.subr.bf16.mxu0 %v692_v0  ;;  %507 = vmatprep.subr.bf16.mxu1 %v692_v0  ;;  %v514_v17 = vpack.c.bf16 %v176_v16, %v175_v15  ;;  %v517_v20 = vpack.c.bf16 %v178_v19, %v177_v18  ;;  %v179_v21 = vld [vmem:[#allocation7 + $0x50] sm:$0xff]  ;;  %v180_v22 = vld [vmem:[#allocation7 + $0x58] sm:$0xff]  ;;  %v181_v24 = vld [vmem:[#allocation7 + $0x60] sm:$0xff] }
  0x4f   :  { %v520_v23 = vpack.c.bf16 %v180_v22, %v179_v21  ;;  %v182_v25 = vld [vmem:[#allocation7 + $0x68] sm:$0xff]  ;;  %v183_v27 = vld [vmem:[#allocation7 + $0x70] sm:$0xff]  ;;  %v184_v28 = vld [vmem:[#allocation7 + $0x78] sm:$0xff] }
  0x50   :  { %429 = vmatmul.mubr.msk.f32.vlgmr.msra.gmra.mrb[0].mxu0 %vm90_vm1, %v80_v10  ;;  %v523_v26 = vpack.c.bf16 %v182_v25, %v181_v24  ;;  %v526_v29 = vpack.c.bf16 %v184_v28, %v183_v27  ;;  %v267_v30 = vld [vmem:[#allocation8] sm:$0xff]  ;;  %v268_v31 = vld [vmem:[#allocation8 + $0x8] sm:$0xff]  ;;  %v269_v32 = vld [vmem:[#allocation8 + $0x10] sm:$0xff] }
  0x51   :  { %498 = vmatprep.mubr.msk.f32.mxu0 %vm693_vm0, %v694_v1  ;;  %509 = vmatpush3.bf16.msra.mxu1 %v508_v11  ;;  %v529_v33 = vpack.c.bf16 %v268_v31, %v267_v30  ;;  %v270_v34 = vld [vmem:[#allocation8 + $0x18] sm:$0xff]  ;;  %v271_v36 = vld [vmem:[#allocation8 + $0x20] sm:$0xff]  ;;  %v272_v37 = vld [vmem:[#allocation8 + $0x28] sm:$0xff] }
  0x52   :  { %510 = vmatprep.subr.bf16.mxu1 %v692_v0  ;;  %v532_v35 = vpack.c.bf16 %v270_v34, %v269_v32  ;;  %v535_v38 = vpack.c.bf16 %v272_v37, %v271_v36  ;;  %v383_v39 = vld [vmem:[%s836_s2] ss:$0 sm:$0xff]  ;;  %v273_v48 = vld [vmem:[#allocation8 + $0x30] sm:$0xff]  ;;  %v274_v49 = vld [vmem:[#allocation8 + $0x38] sm:$0xff] }
  0x53   :  { %530 = vmatpush3.bf16.msra.mxu0 %v529_v33  ;;  %v538_v50 = vpack.c.bf16 %v274_v49, %v273_v48  ;;  %v275_v51 = vld [vmem:[#allocation8 + $0x40] sm:$0xff]  ;;  %v276_v52 = vld [vmem:[#allocation8 + $0x48] sm:$0xff]  ;;  %v277_v54 = vld [vmem:[#allocation8 + $0x50] sm:$0xff] }
  0x54   :  { %531 = vmatprep.subr.bf16.mxu0 %v692_v0  ;;  %v541_v53 = vpack.c.bf16 %v276_v52, %v275_v51  ;;  %v278_v55 = vld [vmem:[#allocation8 + $0x58] sm:$0xff]  ;;  %v279_v57 = vld [vmem:[#allocation8 + $0x60] sm:$0xff]  ;;  %v280_v58 = vld [vmem:[#allocation8 + $0x68] sm:$0xff] }
  0x55   :  { %512 = vmatpush3.bf16.msra.mxu1 %v511_v14  ;;  %v544_v56 = vpack.c.bf16 %v278_v55, %v277_v54  ;;  %v547_v59 = vpack.c.bf16 %v280_v58, %v279_v57  ;;  %v281_v60 = vld [vmem:[#allocation8 + $0x70] sm:$0xff]  ;;  %v282_v61 = vld [vmem:[#allocation8 + $0x78] sm:$0xff]  ;;  %v385_v63 = vld [vmem:[%s838_s4] ss:$0 sm:$0xff]  ;;  %s695_s4 = smov [#allocation10]  }
  0x56   :  { %513 = vmatprep.subr.bf16.mxu1 %v692_v0  ;;  %v550_v62 = vpack.c.bf16 %v282_v61, %v281_v60  ;;  %s372_s28 = sshll.u32 %s695_s4, 4  ;;  %s373_s28 = int_to_ptr.vmem [resolvable:$true] %s372_s28 }
  0x57   :  { %533 = vmatpush3.bf16.msra.mxu0 %v532_v35  ;;  %s656_s29 = scalar_lea.vmem %s373_s28, 128  ;;  %p661_p5 = scmp.lt.s32.totalorder %s373_s28, %s373_s28 }
  0x58   :  { %534 = vmatprep.subr.bf16.mxu0 %v692_v0  ;;  %p657_p4 = scmp.ne.s32.totalorder %s373_s28, %s656_s29  ;;  %p662_p6 = scmp.lt.s32.totalorder %s656_s29, %s656_s29 }
  0x59   :  { %515 = vmatpush3.bf16.msra.mxu1 %v514_v17 }
  0x5a   :  { %516 = vmatprep.subr.bf16.mxu1 %v692_v0  ;;  %p663_p7 = por %p662_p6, %p661_p5 }
  0x5b   :  { %536 = vmatpush3.bf16.msra.mxu0 %v535_v38 }
  0x5c   :  { %537 = vmatprep.subr.bf16.mxu0 %v692_v0  ;;  %p664_p8 = pnand %p663_p7, %p657_p4 }
  0x5d   :  { %518 = vmatpush3.bf16.msra.mxu1 %v517_v20 }
  0x5e   :  { %519 = vmatprep.subr.bf16.mxu1 %v692_v0 }
  0x5f   :  { %539 = vmatpush3.bf16.msra.mxu0 %v538_v50 }
  0x60   :  { %540 = vmatprep.subr.bf16.mxu0 %v692_v0 }
  0x61   :  { %521 = vmatpush3.bf16.msra.mxu1 %v520_v23 }
  0x62   :  { %522 = vmatprep.subr.bf16.mxu1 %v692_v0 }
  0x63   :  { %542 = vmatpush3.bf16.msra.mxu0 %v541_v53 }
  0x64   :  { %543 = vmatprep.subr.bf16.mxu0 %v692_v0 }
  0x65   :  { %524 = vmatpush3.bf16.msra.mxu1 %v523_v26 }
  0x66   :  { %525 = vmatprep.subr.bf16.mxu1 %v692_v0 }
  0x67   :  { %545 = vmatpush3.bf16.msra.mxu0 %v544_v56 }
  0x68   :  { %546 = vmatprep.subr.bf16.mxu0 %v692_v0 }
  0x69   :  { %527 = vmatpush3.bf16.msra.mxu1 %v526_v29 }
  0x6b   :  { %548 = vmatpush3.bf16.msra.mxu0 %v547_v59 }
  0x6c   :  { %549 = vmatprep.subr.bf16.mxu0 %v692_v0  ;;  %v386_v0 = vld [vmem:[%s840_s6] ss:$0 sm:$0xff] }
  0x6f   :  { %551 = vmatpush3.bf16.msra.mxu0 %v550_v62 }
 0x123   :  { %v160_v40 = vpop.f32.mrb[0].mxu0 }
 0x124   :  { %v161_v41 = vadd.f32 %v383_v39, %v160_v40  ;;  %v430_v42 = vpop.f32.mrb[1].mxu0 }
 0x126   :  { %v165_v43 = vmul.f32 0.70710677, %v161_v41  ;;  %v164_v45 = vmul.f32 0.5, %v161_v41 }
 0x128   :  { %562 = verf.f32 %v165_v43 }
 0x132   :  { %v563_v44 = vpop.eup %562 }
 0x133   :  { %v167_v46 = vadd.f32 1.0, %v563_v44 }
 0x135   :  { %v168_v47 = vmul.f32 %v167_v46, %v164_v45 }
 0x137   :  { %464 = vmatmul.mubr.f32.vlgmr.msra.gmra.mrb[0].mxu1 %v168_v47 }
 0x20a   :  { %v258_v1 = vpop.f32.mrb[0].mxu1 }
 0x20b   :  { %v259_v2 = vadd.f32 %v385_v63, %v258_v1  ;;  %v465_v3 = vpop.f32.mrb[1].mxu1 }
 0x20d   :  { %v263_v4 = vmul.f32 0.70710677, %v259_v2  ;;  %v262_v6 = vmul.f32 0.5, %v259_v2 }
 0x20f   :  { %564 = verf.f32 %v263_v4 }
 0x219   :  { %v565_v5 = vpop.eup %564 }
 0x21a   :  { %v265_v7 = vadd.f32 1.0, %v565_v5 }
 0x21c   :  { %v266_v8 = vmul.f32 %v265_v7, %v262_v6 }
 0x21e   :  { %499 = vmatmul.mubr.f32.vlgmr.msra.gmra.mrb[2].mxu0 %v266_v8 }
 0x2f1   :  { %v356_v9 = vpop.f32.mrb[2].mxu0 }
 0x2f2   :  { %v357_v10 = vadd.f32 %v386_v0, %v356_v9  ;;  %v500_v11 = vpop.f32.mrb[3].mxu0 }
 0x2f4   :  { %v361_v12 = vmul.f32 0.70710677, %v357_v10  ;;  %v360_v14 = vmul.f32 0.5, %v357_v10 }
 0x2f6   :  { %566 = verf.f32 %v361_v12 }
 0x300   :  { %v567_v13 = vpop.eup %566 }
 0x301   :  { %v363_v15 = vadd.f32 1.0, %v567_v13 }
 0x303   :  { %v364_v16 = vmul.f32 %v363_v15, %v360_v14 }
 0x305   :  { %365 = vst [vmem:[#allocation10] sm:$0xff] %v364_v16 }
 0x306   :  { %667 = shalt.err (!%p664_p8)
}
 0x307   :  { %s668_s8 = scalar_lea.hbm %s841_s7, 128 }
 0x308   :  { %p669_p9 = scmp.ne.s32.totalorder %s841_s7, %s668_s8  ;;  %p672_p10 = scmp.lt.u32.totalorder %s668_s8, %s841_s7 }
 0x30a   :  { %p674_p11 = pnand %p672_p10, %p669_p9 }
 0x30c   :  { %677 = shalt.err (!%p674_p11)
}
 0x30d   :  { %375 = dma.vmem_to_hbm [thread:$0]  %s373_s28, 128, %s841_s7, [#allocation4]  }
 0x30e   :  { %684 = dma.done.wait [#allocation4], 128  }
 0x30f   :  { %685 = vsyncadd [#allocation4], 4294967168 }
 0x310   :  { %379 = vsyncpa [#allocation3], 1 }
 0x311   :  { %380 = vsyncpa [#allocation6], 1 }
 0x312   :  { %381 = vsyncpa [#allocation9], 1 }
 0x313   :  { %382 = vsyncpa [#allocation4], 1 }

</bundles_post_ra>
